<compile_context>
chip_gen: v7x
topology: tpu7x:2x2x1
jax: 0.10.0
libtpu: 0.0.40
codegen_flags: <defaults>
</compile_context>

<pallas_src>
import functools

import jax
import jax.numpy as jnp
from jax.experimental import pallas as pl
from jax.experimental.pallas import tpu as pltpu

_LANES = 128
_SUBLANES = 8


def _round_up(a, m):
    return ((a + m - 1) // m) * m


def _ipow(v, p):
    """Power with static exponent; integer exponents stay on the VALU."""
    if p == 1:
        return v
    if p == 2:
        return v * v
    if p == 3:
        return v * v * v
    if isinstance(p, int) and p > 0:
        out = v
        for _ in range(p - 1):
            out = out * v
        return out
    return v ** p  # non-integer exponent -> EUP exp/log path


def _focal_dice_kernel(pred_ref, tgt_ref,
                       num_pos_ref, den_pos_ref, num_neg_ref, den_neg_ref,
                       *, p_pos, p_neg, clip_pos, clip_neg,
                       binary_targets, groups):
    r = pl.program_id(2)

    # r is the innermost grid axis, so r == 0 is exactly the first visit of
    # the current (batch, split) output block; zero the resident accumulators
    # there.  (If the grid order ever changes, this gating must be revisited.)
    @pl.when(r == 0)
    def _init():
        num_pos_ref[...] = jnp.zeros_like(num_pos_ref)
        den_pos_ref[...] = jnp.zeros_like(den_pos_ref)
        num_neg_ref[...] = jnp.zeros_like(num_neg_ref)
        den_neg_ref[...] = jnp.zeros_like(den_neg_ref)

    # Tiles arrive in native dtype; upcast in VMEM, accumulate in f32.
    x = pred_ref[...].astype(jnp.float32)   # (rows_tile, 128) logits
    t = tgt_ref[...].astype(jnp.float32)    # (rows_tile, 128) targets

    # sigmoid(x) = 0.5 * tanh(0.5 * x) + 0.5  -> single EUP op, no divide.
    predict = 0.5 * jnp.tanh(0.5 * x) + 0.5

    # Positive branch.
    xs_pos = predict
    if clip_pos is not None and clip_pos >= 0:
        p_pos_v = jnp.minimum(xs_pos + clip_pos, 1.0) * xs_pos
    else:
        p_pos_v = xs_pos

    # Negative branch.
    xs_neg = 1.0 - predict
    if clip_neg is not None and clip_neg >= 0:
        p_neg_v = jnp.minimum(xs_neg + clip_neg, 1.0) * xs_neg
    else:
        p_neg_v = xs_neg

    omt = 1.0 - t
    # Binary-target fast path: t**p == t and (1-t)**p == (1-t).
    t_pow = t if binary_targets else _ipow(t, p_pos)
    omt_pow = omt if binary_targets else _ipow(omt, p_neg)

    c_num_pos = p_pos_v * t
    c_den_pos = _ipow(p_pos_v, p_pos) + t_pow
    c_num_neg = p_neg_v * omt
    c_den_neg = _ipow(p_neg_v, p_neg) + omt_pow

    # Fold (rows_tile, 128) -> (8, 128) with pure VALU vreg adds; the
    # cross-lane/sublane reduction happens later (wrapper, tiny).
    def fold(v):
        return jnp.sum(v.reshape(groups, _SUBLANES, _LANES), axis=0)

    num_pos_ref[...] += fold(c_num_pos)
    den_pos_ref[...] += fold(c_den_pos)
    num_neg_ref[...] += fold(c_num_neg)
    den_neg_ref[...] += fold(c_den_neg)


def _make_in_map(grid_r):
    def in_map(b, s, r):
        return (b, s * grid_r + r, 0)
    return in_map


def _out_map(b, s, r):
    return (b, s, 0, 0)


def focal_dice_loss(logits, target, *, p_pos=2, p_neg=2, clip_pos=0.7,
                    clip_neg=0.5, pos_weight=0.3, reduction='mean',
                    rows_per_tile=4096, binary_targets=False,
                    reduction_splits=None):
    assert logits.shape[0] == target.shape[0], \
        "predict & target batch size don't match"
    B = logits.shape[0]
    # Same flattening as torch .view(B, -1); keep native dtypes (no upcast).
    pred2d = logits.reshape(B, -1)
    tgt2d = target.reshape(B, -1)
    N = pred2d.shape[1]
    assert tgt2d.shape[1] == N, "predict & target feature size don't match"

    # Optionally split each row's reduction across a second parallel grid
    # axis so 2-TC chips stay busy when B is 1 / odd.
    if reduction_splits is None:
        n_split = 2 if (B % 2 == 1) else 1
    else:
        n_split = max(int(reduction_splits), 1)

    # Lay the feature axis out as (rows, 128) so blocks are sublane-dense.
    R = pl.cdiv(N, _LANES)
    R8 = _round_up(max(R, 1), _SUBLANES)
    rows_target = _round_up(min(max(int(rows_per_tile), _SUBLANES), R8),
                            _SUBLANES)
    total_tiles = max(pl.cdiv(R8, rows_target), 1)
    total_tiles = _round_up(total_tiles, n_split)
    grid_r = total_tiles // n_split
    rows_tile = _round_up(pl.cdiv(R8, total_tiles), _SUBLANES)
    R_pad = total_tiles * rows_tile          # over-pad bounded by ~8 rows/tile
    N_pad = R_pad * _LANES
    n_pad = N_pad - N

    if n_pad:
        pred2d = jnp.pad(pred2d, ((0, 0), (0, n_pad)))
        tgt2d = jnp.pad(tgt2d, ((0, 0), (0, n_pad)))
    pred3d = pred2d.reshape(B, R_pad, _LANES)
    tgt3d = tgt2d.reshape(B, R_pad, _LANES)

    # Analytic contribution of padding (logit = 0, target = 0), removed from
    # the sums in the epilogue.  sigmoid(0) = 0.5 exactly, so for the default
    # clips this correction is exact in f32.
    s_pad = 0.5
    if clip_pos is not None and clip_pos >= 0:
        p_pos_pad = min(s_pad + float(clip_pos), 1.0) * s_pad
    else:
        p_pos_pad = s_pad
    xs_neg_pad = 1.0 - s_pad
    if clip_neg is not None and clip_neg >= 0:
        p_neg_pad = min(xs_neg_pad + float(clip_neg), 1.0) * xs_neg_pad
    else:
        p_neg_pad = xs_neg_pad
    if binary_targets:
        t_pad_pow, omt_pad_pow = 0.0, 1.0
    else:
        t_pad_pow = 0.0 ** p_pos
        omt_pad_pow = 1.0 ** p_neg
    pad_den_pos = float(n_pad) * (p_pos_pad ** p_pos + t_pad_pow)
    pad_num_neg = float(n_pad) * p_neg_pad
    pad_den_neg = float(n_pad) * (p_neg_pad ** p_neg + omt_pad_pow)
    # pad_num_pos is 0 (target is 0 on the pad).

    groups = rows_tile // _SUBLANES
    kernel = functools.partial(
        _focal_dice_kernel,
        p_pos=p_pos, p_neg=p_neg,
        clip_pos=clip_pos, clip_neg=clip_neg,
        binary_targets=binary_targets, groups=groups,
    )

    in_spec = pl.BlockSpec((None, rows_tile, _LANES), _make_in_map(grid_r))
    acc_shape = jax.ShapeDtypeStruct((B, n_split, _SUBLANES, _LANES),
                                     jnp.float32)
    acc_spec = pl.BlockSpec((None, None, _SUBLANES, _LANES), _out_map)

    outs = pl.pallas_call(
        kernel,
        out_shape=(acc_shape, acc_shape, acc_shape, acc_shape),
        grid_spec=pltpu.PrefetchScalarGridSpec(
            num_scalar_prefetch=0,
            grid=(B, n_split, grid_r),
            in_specs=[in_spec, in_spec],
            out_specs=[acc_spec, acc_spec, acc_spec, acc_spec],
        ),
        compiler_params=pltpu.CompilerParams(
            dimension_semantics=("parallel", "parallel", "arbitrary"),
            vmem_limit_bytes=32 * 1024 * 1024),
    )(pred3d, tgt3d)

    # Tiny epilogue in plain JAX: reduce the (n_split, 8, 128) partial
    # accumulators per batch row, subtract the analytic pad contribution, and
    # combine into the loss.  NOTE: zero denominators give inf/NaN exactly
    # like the PyTorch reference (intentional parity, no epsilon).
    num_pos = jnp.sum(outs[0], axis=(1, 2, 3))
    den_pos = jnp.sum(outs[1], axis=(1, 2, 3)) - pad_den_pos
    num_neg = jnp.sum(outs[2], axis=(1, 2, 3)) - pad_num_neg
    den_neg = jnp.sum(outs[3], axis=(1, 2, 3)) - pad_den_neg

    loss_pos = 1.0 - 2.0 * num_pos / den_pos
    loss_neg = 1.0 - 2.0 * num_neg / den_neg
    loss = loss_pos * pos_weight + loss_neg * (1.0 - pos_weight)

    if reduction == 'mean':
        return jnp.mean(loss)
    elif reduction == 'sum':
        return jnp.sum(loss)
    elif reduction == 'none':
        return loss
    else:
        raise Exception('Unexpected reduction {}'.format(reduction))


def _reference_focal_dice(logits, target, *, p_pos=2, p_neg=2, clip_pos=0.7,
                          clip_neg=0.5, pos_weight=0.3):
    B = logits.shape[0]
    predict = jax.nn.sigmoid(logits.astype(jnp.float32)).reshape(B, -1)
    tgt = target.reshape(B, -1).astype(jnp.float32)
    m_pos = jnp.minimum(predict + clip_pos, 1.0)
    p_pos_v = m_pos * predict
    num_pos = jnp.sum(p_pos_v * tgt, axis=1)
    den_pos = jnp.sum(p_pos_v ** p_pos + tgt ** p_pos, axis=1)
    xs_neg = 1.0 - predict
    m_neg = jnp.minimum(xs_neg + clip_neg, 1.0)
    p_neg_v = m_neg * xs_neg
    num_neg = jnp.sum(p_neg_v * (1.0 - tgt), axis=1)
    den_neg = jnp.sum(p_neg_v ** p_neg + (1.0 - tgt) ** p_neg, axis=1)
    loss_pos = 1.0 - 2.0 * num_pos / den_pos
    loss_neg = 1.0 - 2.0 * num_neg / den_neg
    loss = loss_pos * pos_weight + loss_neg * (1.0 - pos_weight)
    return jnp.mean(loss)


if __name__ == "__main__":
    key = jax.random.PRNGKey(0)
    k1, k2, k3, k4, k5, k6 = jax.random.split(key, 6)

    # Case 1: B=2, C=4, 16x16 -> flattened N = 1024 (exact tiling, no pad).
    B, C, H, W = 2, 4, 16, 16
    logits = jax.random.normal(k1, (B, C, H, W), dtype=jnp.float32)
    target = (jax.random.uniform(k2, (B, C, H, W)) > 0.5).astype(jnp.float32)
    loss = jax.block_until_ready(focal_dice_loss(logits, target))
    ref = _reference_focal_dice(logits, target)
    assert jnp.allclose(loss, ref, rtol=1e-5, atol=1e-5), (loss, ref)

    # Case 1b: binary-target fast path gives the same value for {0,1} masks.
    loss_b = jax.block_until_ready(
        focal_dice_loss(logits, target, binary_targets=True))
    assert jnp.allclose(loss_b, ref, rtol=1e-5, atol=1e-5), (loss_b, ref)

    # Case 2: N = 300 (not a multiple of 128) exercises the analytic
    # pad-contribution correction.
    B2, C2, H2, W2 = 2, 3, 10, 10
    logits2 = jax.random.normal(k3, (B2, C2, H2, W2), dtype=jnp.float32)
    target2 = (jax.random.uniform(k4, (B2, C2, H2, W2)) > 0.5).astype(jnp.float32)
    loss2 = jax.block_until_ready(focal_dice_loss(logits2, target2))
    ref2 = _reference_focal_dice(logits2, target2)
    assert jnp.allclose(loss2, ref2, rtol=1e-5, atol=1e-5), (loss2, ref2)

    # Case 3: native bf16 logits stream without any wrapper upcast.
    logits_bf16 = logits.astype(jnp.bfloat16)
    loss3 = jax.block_until_ready(focal_dice_loss(logits_bf16, target))
    ref3 = _reference_focal_dice(logits_bf16, target)
    assert jnp.allclose(loss3, ref3, rtol=1e-4, atol=1e-4), (loss3, ref3)

    # Case 4: B=1 -> auto reduction split (2 parallel partial accumulators).
    B4, C4, H4, W4 = 1, 4, 24, 24
    logits4 = jax.random.normal(k5, (B4, C4, H4, W4), dtype=jnp.float32)
    target4 = (jax.random.uniform(k6, (B4, C4, H4, W4)) > 0.5).astype(jnp.float32)
    loss4 = jax.block_until_ready(focal_dice_loss(logits4, target4))
    ref4 = _reference_focal_dice(logits4, target4)
    assert jnp.allclose(loss4, ref4, rtol=1e-5, atol=1e-5), (loss4, ref4)

    # Reduction modes.
    loss_none = jax.block_until_ready(
        focal_dice_loss(logits, target, reduction='none'))
    assert loss_none.shape == (B,)

    print("KERNEL_OK")
</pallas_src>

<mosaic_0001>
module attributes {stable_mosaic.version = 11 : i64} {
  func.func @_focal_dice_kernel(%arg0: i32, %arg1: i32, %arg2: i32, %arg3: memref<1x8x128xf32, #tpu.memory_space<vmem>>, %arg4: memref<1x8x128xf32, #tpu.memory_space<vmem>>, %arg5: memref<1x1x8x128xf32, #tpu.memory_space<vmem>>, %arg6: memref<1x1x8x128xf32, #tpu.memory_space<vmem>>, %arg7: memref<1x1x8x128xf32, #tpu.memory_space<vmem>>, %arg8: memref<1x1x8x128xf32, #tpu.memory_space<vmem>>) attributes {dimension_semantics = [#tpu.dimension_semantics<parallel>, #tpu.dimension_semantics<parallel>, #tpu.dimension_semantics<arbitrary>], iteration_bounds = array<i64: 2, 1, 1>, scalar_prefetch = 0 : i64, scratch_operands = 0 : i64, tpu.core_type = #tpu.core_type<tc>, window_params = [{transform_indices = @transform_0, window_bounds = array<i64: 1, 8, 128>}, {transform_indices = @transform_1, window_bounds = array<i64: 1, 8, 128>}, {transform_indices = @transform_2, window_bounds = array<i64: 1, 1, 8, 128>}, {transform_indices = @transform_3, window_bounds = array<i64: 1, 1, 8, 128>}, {transform_indices = @transform_4, window_bounds = array<i64: 1, 1, 8, 128>}, {transform_indices = @transform_5, window_bounds = array<i64: 1, 1, 8, 128>}]} {
    %c0_i32 = arith.constant 0 : i32
    %0 = arith.cmpi eq, %arg2, %c0_i32 : i32
    %1 = arith.extui %0 : i1 to i32
    %c0_i32_0 = arith.constant 0 : i32
    %2 = arith.cmpi ne, %1, %c0_i32_0 : i32
    scf.if %2 {
      %cst_50 = arith.constant 0.000000e+00 : f32
      %68 = vector.broadcast %cst_50 : f32 to vector<8x128xf32>
      %c0_51 = arith.constant 0 : index
      %c0_52 = arith.constant 0 : index
      %c0_53 = arith.constant 0 : index
      %c0_54 = arith.constant 0 : index
      %69 = vector.load %arg5[%c0_51, %c0_52, %c0_53, %c0_54] : memref<1x1x8x128xf32, #tpu.memory_space<vmem>>, vector<1x1x8x128xf32>
      %70 = vector.shape_cast %69 : vector<1x1x8x128xf32> to vector<8x128xf32>
      %71 = vector.shape_cast %68 : vector<8x128xf32> to vector<1x1x8x128xf32>
      tpu.vector_store %arg5[%c0_51, %c0_52, %c0_53, %c0_54], %71 {strides = array<i32>} : memref<1x1x8x128xf32, #tpu.memory_space<vmem>>, vector<1x1x8x128xf32>,
      %cst_55 = arith.constant 0.000000e+00 : f32
      %72 = vector.broadcast %cst_55 : f32 to vector<8x128xf32>
      %c0_56 = arith.constant 0 : index
      %c0_57 = arith.constant 0 : index
      %c0_58 = arith.constant 0 : index
      %c0_59 = arith.constant 0 : index
      %73 = vector.load %arg6[%c0_56, %c0_57, %c0_58, %c0_59] : memref<1x1x8x128xf32, #tpu.memory_space<vmem>>, vector<1x1x8x128xf32>
      %74 = vector.shape_cast %73 : vector<1x1x8x128xf32> to vector<8x128xf32>
      %75 = vector.shape_cast %72 : vector<8x128xf32> to vector<1x1x8x128xf32>
      tpu.vector_store %arg6[%c0_56, %c0_57, %c0_58, %c0_59], %75 {strides = array<i32>} : memref<1x1x8x128xf32, #tpu.memory_space<vmem>>, vector<1x1x8x128xf32>,
      %cst_60 = arith.constant 0.000000e+00 : f32
      %76 = vector.broadcast %cst_60 : f32 to vector<8x128xf32>
      %c0_61 = arith.constant 0 : index
      %c0_62 = arith.constant 0 : index
      %c0_63 = arith.constant 0 : index
      %c0_64 = arith.constant 0 : index
      %77 = vector.load %arg7[%c0_61, %c0_62, %c0_63, %c0_64] : memref<1x1x8x128xf32, #tpu.memory_space<vmem>>, vector<1x1x8x128xf32>
      %78 = vector.shape_cast %77 : vector<1x1x8x128xf32> to vector<8x128xf32>
      %79 = vector.shape_cast %76 : vector<8x128xf32> to vector<1x1x8x128xf32>
      tpu.vector_store %arg7[%c0_61, %c0_62, %c0_63, %c0_64], %79 {strides = array<i32>} : memref<1x1x8x128xf32, #tpu.memory_space<vmem>>, vector<1x1x8x128xf32>,
      %cst_65 = arith.constant 0.000000e+00 : f32
      %80 = vector.broadcast %cst_65 : f32 to vector<8x128xf32>
      %c0_66 = arith.constant 0 : index
      %c0_67 = arith.constant 0 : index
      %c0_68 = arith.constant 0 : index
      %c0_69 = arith.constant 0 : index
      %81 = vector.load %arg8[%c0_66, %c0_67, %c0_68, %c0_69] : memref<1x1x8x128xf32, #tpu.memory_space<vmem>>, vector<1x1x8x128xf32>
      %82 = vector.shape_cast %81 : vector<1x1x8x128xf32> to vector<8x128xf32>
      %83 = vector.shape_cast %80 : vector<8x128xf32> to vector<1x1x8x128xf32>
      tpu.vector_store %arg8[%c0_66, %c0_67, %c0_68, %c0_69], %83 {strides = array<i32>} : memref<1x1x8x128xf32, #tpu.memory_space<vmem>>, vector<1x1x8x128xf32>,
    } else {
    }
    %c0 = arith.constant 0 : index
    %c0_1 = arith.constant 0 : index
    %c0_2 = arith.constant 0 : index
    %3 = vector.load %arg3[%c0, %c0_1, %c0_2] : memref<1x8x128xf32, #tpu.memory_space<vmem>>, vector<1x8x128xf32>
    %4 = vector.shape_cast %3 : vector<1x8x128xf32> to vector<8x128xf32>
    %c0_3 = arith.constant 0 : index
    %c0_4 = arith.constant 0 : index
    %c0_5 = arith.constant 0 : index
    %5 = vector.load %arg4[%c0_3, %c0_4, %c0_5] : memref<1x8x128xf32, #tpu.memory_space<vmem>>, vector<1x8x128xf32>
    %6 = vector.shape_cast %5 : vector<1x8x128xf32> to vector<8x128xf32>
    %cst = arith.constant 5.000000e-01 : f32
    %7 = vector.broadcast %cst : f32 to vector<8x128xf32>
    %8 = arith.mulf %7, %4 : vector<8x128xf32>
    %9 = math.tanh %8 : vector<8x128xf32>
    %cst_6 = arith.constant 5.000000e-01 : f32
    %10 = vector.broadcast %cst_6 : f32 to vector<8x128xf32>
    %11 = arith.mulf %10, %9 : vector<8x128xf32>
    %cst_7 = arith.constant 5.000000e-01 : f32
    %12 = vector.broadcast %cst_7 : f32 to vector<8x128xf32>
    %13 = arith.addf %11, %12 : vector<8x128xf32>
    %cst_8 = arith.constant 0.699999988 : f32
    %14 = vector.broadcast %cst_8 : f32 to vector<8x128xf32>
    %15 = arith.addf %13, %14 : vector<8x128xf32>
    %cst_9 = arith.constant 1.000000e+00 : f32
    %16 = vector.broadcast %cst_9 : f32 to vector<8x128xf32>
    %17 = arith.minimumf %15, %16 : vector<8x128xf32>
    %18 = arith.mulf %17, %13 : vector<8x128xf32>
    %cst_10 = arith.constant 1.000000e+00 : f32
    %19 = vector.broadcast %cst_10 : f32 to vector<8x128xf32>
    %20 = arith.subf %19, %13 : vector<8x128xf32>
    %cst_11 = arith.constant 5.000000e-01 : f32
    %21 = vector.broadcast %cst_11 : f32 to vector<8x128xf32>
    %22 = arith.addf %20, %21 : vector<8x128xf32>
    %cst_12 = arith.constant 1.000000e+00 : f32
    %23 = vector.broadcast %cst_12 : f32 to vector<8x128xf32>
    %24 = arith.minimumf %22, %23 : vector<8x128xf32>
    %25 = arith.mulf %24, %20 : vector<8x128xf32>
    %cst_13 = arith.constant 1.000000e+00 : f32
    %26 = vector.broadcast %cst_13 : f32 to vector<8x128xf32>
    %27 = arith.subf %26, %6 : vector<8x128xf32>
    %28 = arith.mulf %6, %6 : vector<8x128xf32>
    %29 = arith.mulf %27, %27 : vector<8x128xf32>
    %30 = arith.mulf %18, %6 : vector<8x128xf32>
    %31 = arith.mulf %18, %18 : vector<8x128xf32>
    %32 = arith.addf %31, %28 : vector<8x128xf32>
    %33 = arith.mulf %25, %27 : vector<8x128xf32>
    %34 = arith.mulf %25, %25 : vector<8x128xf32>
    %35 = arith.addf %34, %29 : vector<8x128xf32>
    %c0_14 = arith.constant 0 : index
    %c0_15 = arith.constant 0 : index
    %c0_16 = arith.constant 0 : index
    %c0_17 = arith.constant 0 : index
    %36 = vector.load %arg5[%c0_14, %c0_15, %c0_16, %c0_17] : memref<1x1x8x128xf32, #tpu.memory_space<vmem>>, vector<1x1x8x128xf32>
    %37 = vector.shape_cast %36 : vector<1x1x8x128xf32> to vector<8x128xf32>
    %38 = vector.shape_cast %30 : vector<8x128xf32> to vector<1x8x128xf32>
    %cst_18 = arith.constant dense<0.000000e+00> : vector<8x128xf32>
    %39 = vector.multi_reduction <add>, %38, %cst_18 [0] : vector<1x8x128xf32> to vector<8x128xf32>
    %40 = arith.addf %37, %39 : vector<8x128xf32>
    %c0_19 = arith.constant 0 : index
    %c0_20 = arith.constant 0 : index
    %c0_21 = arith.constant 0 : index
    %c0_22 = arith.constant 0 : index
    %41 = vector.load %arg5[%c0_19, %c0_20, %c0_21, %c0_22] : memref<1x1x8x128xf32, #tpu.memory_space<vmem>>, vector<1x1x8x128xf32>
    %42 = vector.shape_cast %41 : vector<1x1x8x128xf32> to vector<8x128xf32>
    %43 = vector.shape_cast %40 : vector<8x128xf32> to vector<1x1x8x128xf32>
    tpu.vector_store %arg5[%c0_19, %c0_20, %c0_21, %c0_22], %43 {strides = array<i32>} : memref<1x1x8x128xf32, #tpu.memory_space<vmem>>, vector<1x1x8x128xf32>,
    %c0_23 = arith.constant 0 : index
    %c0_24 = arith.constant 0 : index
    %c0_25 = arith.constant 0 : index
    %c0_26 = arith.constant 0 : index
    %44 = vector.load %arg6[%c0_23, %c0_24, %c0_25, %c0_26] : memref<1x1x8x128xf32, #tpu.memory_space<vmem>>, vector<1x1x8x128xf32>
    %45 = vector.shape_cast %44 : vector<1x1x8x128xf32> to vector<8x128xf32>
    %46 = vector.shape_cast %32 : vector<8x128xf32> to vector<1x8x128xf32>
    %cst_27 = arith.constant dense<0.000000e+00> : vector<8x128xf32>
    %47 = vector.multi_reduction <add>, %46, %cst_27 [0] : vector<1x8x128xf32> to vector<8x128xf32>
    %48 = arith.addf %45, %47 : vector<8x128xf32>
    %c0_28 = arith.constant 0 : index
    %c0_29 = arith.constant 0 : index
    %c0_30 = arith.constant 0 : index
    %c0_31 = arith.constant 0 : index
    %49 = vector.load %arg6[%c0_28, %c0_29, %c0_30, %c0_31] : memref<1x1x8x128xf32, #tpu.memory_space<vmem>>, vector<1x1x8x128xf32>
    %50 = vector.shape_cast %49 : vector<1x1x8x128xf32> to vector<8x128xf32>
    %51 = vector.shape_cast %48 : vector<8x128xf32> to vector<1x1x8x128xf32>
    tpu.vector_store %arg6[%c0_28, %c0_29, %c0_30, %c0_31], %51 {strides = array<i32>} : memref<1x1x8x128xf32, #tpu.memory_space<vmem>>, vector<1x1x8x128xf32>,
    %c0_32 = arith.constant 0 : index
    %c0_33 = arith.constant 0 : index
    %c0_34 = arith.constant 0 : index
    %c0_35 = arith.constant 0 : index
    %52 = vector.load %arg7[%c0_32, %c0_33, %c0_34, %c0_35] : memref<1x1x8x128xf32, #tpu.memory_space<vmem>>, vector<1x1x8x128xf32>
    %53 = vector.shape_cast %52 : vector<1x1x8x128xf32> to vector<8x128xf32>
    %54 = vector.shape_cast %33 : vector<8x128xf32> to vector<1x8x128xf32>
    %cst_36 = arith.constant dense<0.000000e+00> : vector<8x128xf32>
    %55 = vector.multi_reduction <add>, %54, %cst_36 [0] : vector<1x8x128xf32> to vector<8x128xf32>
    %56 = arith.addf %53, %55 : vector<8x128xf32>
    %c0_37 = arith.constant 0 : index
    %c0_38 = arith.constant 0 : index
    %c0_39 = arith.constant 0 : index
    %c0_40 = arith.constant 0 : index
    %57 = vector.load %arg7[%c0_37, %c0_38, %c0_39, %c0_40] : memref<1x1x8x128xf32, #tpu.memory_space<vmem>>, vector<1x1x8x128xf32>
    %58 = vector.shape_cast %57 : vector<1x1x8x128xf32> to vector<8x128xf32>
    %59 = vector.shape_cast %56 : vector<8x128xf32> to vector<1x1x8x128xf32>
    tpu.vector_store %arg7[%c0_37, %c0_38, %c0_39, %c0_40], %59 {strides = array<i32>} : memref<1x1x8x128xf32, #tpu.memory_space<vmem>>, vector<1x1x8x128xf32>,
    %c0_41 = arith.constant 0 : index
    %c0_42 = arith.constant 0 : index
    %c0_43 = arith.constant 0 : index
    %c0_44 = arith.constant 0 : index
    %60 = vector.load %arg8[%c0_41, %c0_42, %c0_43, %c0_44] : memref<1x1x8x128xf32, #tpu.memory_space<vmem>>, vector<1x1x8x128xf32>
    %61 = vector.shape_cast %60 : vector<1x1x8x128xf32> to vector<8x128xf32>
    %62 = vector.shape_cast %35 : vector<8x128xf32> to vector<1x8x128xf32>
    %cst_45 = arith.constant dense<0.000000e+00> : vector<8x128xf32>
    %63 = vector.multi_reduction <add>, %62, %cst_45 [0] : vector<1x8x128xf32> to vector<8x128xf32>
    %64 = arith.addf %61, %63 : vector<8x128xf32>
    %c0_46 = arith.constant 0 : index
    %c0_47 = arith.constant 0 : index
    %c0_48 = arith.constant 0 : index
    %c0_49 = arith.constant 0 : index
    %65 = vector.load %arg8[%c0_46, %c0_47, %c0_48, %c0_49] : memref<1x1x8x128xf32, #tpu.memory_space<vmem>>, vector<1x1x8x128xf32>
    %66 = vector.shape_cast %65 : vector<1x1x8x128xf32> to vector<8x128xf32>
    %67 = vector.shape_cast %64 : vector<8x128xf32> to vector<1x1x8x128xf32>
    tpu.vector_store %arg8[%c0_46, %c0_47, %c0_48, %c0_49], %67 {strides = array<i32>} : memref<1x1x8x128xf32, #tpu.memory_space<vmem>>, vector<1x1x8x128xf32>,
    return
  }
  func.func @transform_0(%arg0: i32, %arg1: i32, %arg2: i32) -> (i32, i32, i32) {
    %c1_i32 = arith.constant 1 : i32
    %0 = arith.muli %arg1, %c1_i32 : i32
    %1 = arith.addi %0, %arg2 : i32
    %c0_i32 = arith.constant 0 : i32
    %c0_i32_0 = arith.constant 0 : i32
    return %arg0, %1, %c0_i32 : i32, i32, i32
  }
  func.func @transform_1(%arg0: i32, %arg1: i32, %arg2: i32) -> (i32, i32, i32) {
    %c1_i32 = arith.constant 1 : i32
    %0 = arith.muli %arg1, %c1_i32 : i32
    %1 = arith.addi %0, %arg2 : i32
    %c0_i32 = arith.constant 0 : i32
    %c0_i32_0 = arith.constant 0 : i32
    return %arg0, %1, %c0_i32 : i32, i32, i32
  }
  func.func @transform_2(%arg0: i32, %arg1: i32, %arg2: i32) -> (i32, i32, i32, i32) {
    %c0_i32 = arith.constant 0 : i32
    %c0_i32_0 = arith.constant 0 : i32
    %c0_i32_1 = arith.constant 0 : i32
    return %arg0, %arg1, %c0_i32, %c0_i32_0 : i32, i32, i32, i32
  }
  func.func @transform_3(%arg0: i32, %arg1: i32, %arg2: i32) -> (i32, i32, i32, i32) {
    %c0_i32 = arith.constant 0 : i32
    %c0_i32_0 = arith.constant 0 : i32
    %c0_i32_1 = arith.constant 0 : i32
    return %arg0, %arg1, %c0_i32, %c0_i32_0 : i32, i32, i32, i32
  }
  func.func @transform_4(%arg0: i32, %arg1: i32, %arg2: i32) -> (i32, i32, i32, i32) {
    %c0_i32 = arith.constant 0 : i32
    %c0_i32_0 = arith.constant 0 : i32
    %c0_i32_1 = arith.constant 0 : i32
    return %arg0, %arg1, %c0_i32, %c0_i32_0 : i32, i32, i32, i32
  }
  func.func @transform_5(%arg0: i32, %arg1: i32, %arg2: i32) -> (i32, i32, i32, i32) {
    %c0_i32 = arith.constant 0 : i32
    %c0_i32_0 = arith.constant 0 : i32
    %c0_i32_1 = arith.constant 0 : i32
    return %arg0, %arg1, %c0_i32, %c0_i32_0 : i32, i32, i32, i32
  }
}

</mosaic_0001>

<bundles_post_ra>
// kernel: tpu_custom_call.1
= control target key start
LH: loop header
LB: loop body
LE: loop exit
PB: predicated region body
PF: predicated region fallthrough
CT: control target
= control target key end

     0   :  { %s1404_s0 = inlined_call_operand.hbm [shape: f32[2,8,128], index: 0, kind: input, shape index: {}]   ;;  %s1405_s1 = inlined_call_operand.hbm [shape: f32[2,8,128], index: 1, kind: input, shape index: {}]   ;;  %s1406_s2 = inlined_call_operand.hbm [shape: f32[2,1,8,128], index: 2, kind: output, shape index: {0}]   ;;  %s1407_s3 = inlined_call_operand.hbm [shape: f32[2,1,8,128], index: 3, kind: output, shape index: {1}]   ;;  %s1408_s4 = inlined_call_operand.hbm [shape: f32[2,1,8,128], index: 4, kind: output, shape index: {2}]   ;;  %s1409_s5 = inlined_call_operand.hbm [shape: f32[2,1,8,128], index: 5, kind: output, shape index: {3}]  }
   0x1   :  { %1419 = sst [smem:[#allocation20_spill]] %s1404_s0 }
   0x2   :  { %1420 = sst [smem:[#allocation21_spill]] %s1405_s1 }
   0x3   :  { %11 = vsyncpa [#allocation3], 0 }
   0x4   :  { %13 = vsyncpa [#allocation3 + $0x1], 0 }
   0x5   :  { %14 = vsyncpa [#allocation6], 0 }
   0x6   :  { %16 = vsyncpa [#allocation6 + $0x1], 0 }
   0x7   :  { %17 = vsyncpa [#allocation4], 0 }
   0x8   :  { %19 = vsyncpa [#allocation4 + $0x1], 0 }
   0x9   :  { %20 = vsyncpa [#allocation9], 0 }
   0xa   :  { %22 = vsyncpa [#allocation9 + $0x1], 0 }
   0xb   :  { %23 = vsyncpa [#allocation12], 0 }
   0xc   :  { %25 = vsyncpa [#allocation12 + $0x1], 0  ;;  %s1055_s18 = smov 0   ;;  %s1057_s19 = smov 0  }
   0xd   :  { %s1059_s20 = smov 0   ;;  %s1061_s21 = smov 0  }
   0xe   :  { %s1063_s22 = smov 0   ;;  %s1065_s23 = smov 0  }
   0xf LB: > { %1421 = sst [smem:[#allocation18_spill]] %s1013_s22  ;;  %s1086_s24 = sadd.s32 4294967295, %s1017_s23   ;;  %s1017_s23 = sphi %s1065_s23, %s31_s23   ;;  %s1013_s22 = sphi %s1063_s22, %s1445_s22   ;;  %s1009_s21 = sphi %s1061_s21, %s1444_s21   ;;  %s1005_s20 = sphi %s1059_s20, %s1448_s20   ;;  %s1001_s19 = sphi %s1057_s19, %s1447_s19   ;;  %s997_s18 = sphi %s1055_s18, %s1446_s18  }
  0x10   : > { %s1410_s25 = sadd.s32 4294967294, %s1017_s23   ;;  %s50_s26 = sadd.s32 1, %s1013_s22 }
  0x11   : > { %s61_s27 = sadd.s32 1, %s1005_s20  ;;  %p52_p0 = scmp.ge.s32.totalorder %s50_s26, 2 }
  0x12   : > { %p68_p1 = scmp.ne.s32.totalorder %s1005_s20, %s1001_s19  ;;  %p69_p2 = scmp.eq.s32.totalorder %s1017_s23, 0 }
  0x13   : > { %p74_p3 = scmp.ne.s32.totalorder %s1001_s19, %s997_s18  ;;  %s1450_s26 = smov (%p52_p0, %s50_s26), 0 }
  0x14   : > { %1422 = sst [smem:[#allocation19_spill]] %s1450_s26  ;;  %p1098_p4 = por %p69_p2, %p68_p1 }
  0x15   : > { %p75_p5 = scmp.eq.s32.totalorder %s1086_s24, 0  ;;  %s56_s29 = ssub.s32 %s1013_s22, %s1450_s26 }
  0x16   : > { %p130_p6 = scmp.eq.s32.totalorder %s1086_s24, 1  ;;  %p59_p7 = scmp.eq.s32.totalorder %s56_s29, 0 }
  0x17   : > { %p1106_p8 = por %p75_p5, %p74_p3  ;;  %p136_p10 = scmp.eq.s32.totalorder %s1410_s25, 1 }
  0x18   : > { %p1110_p9 = por %p130_p6, %p68_p1  ;;  %p726_p13 = scmp.lt.s32.totalorder %s1017_s23, 2 }
  0x19   : > { %s1424_s30 = scalar_select %p1106_p8, 1, 0 }
  0x1a   : > { %s1425_s6 = scalar_select %p1110_p9, 1, 0 }
  0x1b   : > { %s1117_s7 = scalar_select %p59_p7, %s1005_s20, %s61_s27  }
  0x1c   : > { %p1119_p11 = por %p136_p10, %p74_p3  ;;  %s1126_s9 = sand.u32 1, %s1005_s20  }
  0x1d   : > { %s1411_s10 = sshll.u32 %s1126_s9, 3  ;;  %s674_s11 = sshll.u32 %s1013_s22, 7 }
  0x1e   : > { %s1426_s8 = scalar_select %p1119_p11, 1, 0 }
  0x1f   : > { %s1427_s0 = sld [smem:[#allocation20_spill]]  ;;  %s244_s15 = scalar_lea.vmem [#allocation2], %s1411_s10 }
  0x20   : > { %s253_s16 = sshll.u32 %s244_s15, 4  ;;  %p1143_p0 = pnand %p726_p13, %p1098_p4  ;;  %s1139_s16 = int_to_ptr.vmem [resolvable:$true] %s253_s16 }
  0x21   : > { %s241_s27 = scalar_lea.sflag [#allocation3], %s1126_s9 }
  0x22   : > { %p781_p5 = pneg %p1143_p0 }
  0x25   : > { %s1135_s14 = scalar_lea.hbm %s1427_s0, %s674_s11  ;;  %s784_s28 = scalar_lea.hbm %s1427_s0, 256 }
  0x26   : > { %s779_s29 = scalar_lea.hbm %s1135_s14, 128  ;;  %p785_p4 = scmp.lt.u32.totalorder %s1135_s14, %s1427_s0 }
  0x27   : > { %p780_p3 = scmp.ne.s32.totalorder %s1135_s14, %s779_s29  ;;  %p786_p10 = scmp.lt.u32.totalorder %s784_s28, %s779_s29 }
  0x28   : > { %p788_p12 = scmp.lt.u32.totalorder %s779_s29, %s1135_s14 }
  0x29   : > { %p782_p6 = pnand %p781_p5, %p780_p3  ;;  %p787_p13 = por %p786_p10, %p785_p4 }
  0x2b   : > { %p783_p7 = pneg %p782_p6  ;;  %p789_p1 = por %p788_p12, %p787_p13 }
  0x2d   : > { %p790_p2 = pnand %p789_p1, %p783_p7 }
  0x2f   : > { %793 = shalt.err (!%p790_p2)
}
  0x30   : > { %s794_s10 = scalar_lea.vmem %s1139_s16, 128  ;;  %s1019_s12 = smov [#allocation2]  }
  0x31   : > { %p795_p3 = scmp.ne.s32.totalorder %s1139_s16, %s794_s10  ;;  %s799_s13 = sshll.u32 %s1019_s12, 4  ;;  %s800_s13 = int_to_ptr.vmem [resolvable:$false] %s799_s13 }
  0x32   : > { %s801_s25 = scalar_lea.vmem %s800_s13, 256  ;;  %p802_p9 = scmp.lt.s32.totalorder %s1139_s16, %s800_s13 }
  0x33   : > { %p797_p6 = pnand %p795_p3, %p781_p5  ;;  %p803_p4 = scmp.lt.s32.totalorder %s801_s25, %s794_s10 }
  0x35   : > { %p798_p11 = pneg %p797_p6  ;;  %p804_p10 = por %p803_p4, %p802_p9 }
  0x37   : > { %p805_p12 = pnand %p804_p10, %p798_p11 }
  0x39   : > { %808 = shalt.err (!%p805_p12)
}
  0x3a   : > { %709 = dma.hbm_to_vmem [thread:$0]  (!%p1143_p0), %s1135_s14, 128, %s1139_s16, %s241_s27  }
  0x3b   : > { %p1429_p1 = scmp.lt.s32.totalorder %s1017_s23, 3  ;;  %p1430_p2 = scmp.ge.s32.totalorder %s1017_s23, 1 }
  0x3c   : > { %s1432_s1 = sld [smem:[#allocation21_spill]]  ;;  %s1433_s12 = sshll.u32 %s1126_s9, 3 }
  0x3d   : > { %p1179_p7 = pnand %p1430_p2, %p1429_p1  ;;  %s264_s13 = scalar_lea.vmem [#allocation5], %s1433_s12 }
  0x3e   : > { %s273_s25 = sshll.u32 %s264_s13, 4  ;;  %s261_s14 = scalar_lea.sflag [#allocation6], %s1126_s9  ;;  %s274_s25 = int_to_ptr.vmem [resolvable:$true] %s273_s25 }
  0x3f   : > { %s1431_s29 = scalar_select %p1179_p7, 1, 0 }
  0x42   : > { %s1188_s15 = scalar_lea.hbm %s1432_s1, %s674_s11  ;;  %s814_s11 = scalar_lea.hbm %s1432_s1, 256 }
  0x43   : > { %s809_s16 = scalar_lea.hbm %s1188_s15, 128  ;;  %p815_p3 = scmp.lt.u32.totalorder %s1188_s15, %s1432_s1 }
  0x44   : > { %p810_p9 = scmp.ne.s32.totalorder %s1188_s15, %s809_s16  ;;  %p816_p6 = scmp.lt.u32.totalorder %s814_s11, %s809_s16 }
  0x45   : > { %p818_p10 = scmp.lt.u32.totalorder %s809_s16, %s1188_s15 }
  0x46   : > { %p812_p11 = pnand %p810_p9, %p781_p5  ;;  %p817_p4 = por %p816_p6, %p815_p3 }
  0x48   : > { %p813_p13 = pneg %p812_p11  ;;  %p819_p12 = por %p818_p10, %p817_p4 }
  0x4a   : > { %p820_p1 = pnand %p819_p12, %p813_p13 }
  0x4c   : > { %823 = shalt.err (!%p820_p1)
}
  0x4d   : > { %s824_s9 = scalar_lea.vmem %s274_s25, 128  ;;  %s1020_s12 = smov [#allocation5]  }
  0x4e   : > { %p825_p2 = scmp.ne.s32.totalorder %s274_s25, %s824_s9  ;;  %s829_s0 = sshll.u32 %s1020_s12, 4  ;;  %s830_s0 = int_to_ptr.vmem [resolvable:$false] %s829_s0 }
  0x4f   : > { %s831_s13 = scalar_lea.vmem %s830_s0, 256  ;;  %p832_p8 = scmp.lt.s32.totalorder %s274_s25, %s830_s0 }
  0x50   : > { %p827_p9 = pnand %p825_p2, %p781_p5  ;;  %p833_p7 = scmp.lt.s32.totalorder %s831_s13, %s824_s9 }
  0x52   : > { %p828_p11 = pneg %p827_p9  ;;  %p834_p3 = por %p833_p7, %p832_p8 }
  0x54   : > { %p835_p6 = pnand %p834_p3, %p828_p11 }
  0x56   : > { %838 = shalt.err (!%p835_p6)
}
  0x57   : > { %712 = dma.hbm_to_vmem [thread:$0]  (!%p1143_p0), %s1188_s15, 128, %s274_s25, %s261_s14  }
  0x58   : > { %p1434_p13 = scmp.ne.s32.totalorder %s1431_s29, 0 }
  0x59   : > { %s1215_s16 = sand.u32 (!%p1434_p13), 1, %s1001_s19   ;;  %p1435_p8 = scmp.ne.s32.totalorder (!%p1434_p13), %s1424_s30, 0 }
  0x5a   : > { %282 = sbr.rel (%p1434_p13) target bundleno = 213 (0xd5), region = 28  ;;  %s1218_s27 = sshll.u32 (!%p1434_p13), %s1215_s16, 3 }
  0x5b   : > { %s285_s11 = scalar_lea.sflag (!%p1434_p13), [#allocation3], %s1215_s16  ;;  %s288_s10 = scalar_lea.vmem (!%p1434_p13), [#allocation2], %s1218_s27 }
  0x61   : > { %976 = dma.done.wait (%p1435_p8), %s285_s11, 128  }
  0x62   : > { %978 = vsyncadd (%p1435_p8), %s285_s11, 4294967168  ;;  %s294_s17 = scalar_lea.sflag [#allocation6], %s1215_s16  ;;  %s297_s29 = scalar_lea.vmem [#allocation5], %s1218_s27 }
  0x63   : > { %980 = dma.done.wait (%p1435_p8), %s294_s17, 128  }
  0x64   : > { %982 = vsyncadd (%p1435_p8), %s294_s17, 4294967168  ;;  %v354_v0 = vld [vmem:[%s288_s10] sm:$0xff]  ;;  %v355_v5 = vld [vmem:[%s297_s29] sm:$0xff]  ;;  %s1414_s15 = scalar_lea.vmem [#allocation10], %s1218_s27  ;;  %s1237_s14 = sshll.u32 %s1009_s21, 7 }
  0x65   : > { %v356_v1 = vmul.f32 0.5, %v354_v0  ;;  %s450_s25 = sshll.u32 %s1414_s15, 4  ;;  %v367_v10 = vsub.f32 1.0, %v355_v5  ;;  %v368_v12 = vmul.f32 %v355_v5, %v355_v5  ;;  %s322_s28 = scalar_lea.vmem [#allocation7], %s1218_s27  ;;  %s1239_s25 = int_to_ptr.vmem [resolvable:$true] %s450_s25 }
  0x66   : > { %s422_s9 = sshll.u32 %s322_s28, 4  ;;  %s1415_s12 = scalar_lea.vmem [#allocation8], %s1218_s27  ;;  %s1257_s9 = int_to_ptr.vmem [resolvable:$true] %s422_s9 }
  0x67   : > { %777 = vtanh.f32 %v356_v1  ;;  %v369_v17 = vmul.f32 %v367_v10, %v367_v10  ;;  %s436_s0 = sshll.u32 %s1415_s12, 4  ;;  %s1249_s11 = scalar_lea.hbm %s1407_s3, %s1237_s14  ;;  %s1259_s0 = int_to_ptr.vmem [resolvable:$true] %s436_s0 }
  0x68   : > { %s1255_s29 = scalar_lea.hbm %s1406_s2, %s1237_s14  ;;  %s1418_s30 = scalar_lea.vmem [#allocation11], %s1218_s27 }
  0x69   : > { %s1264_s13 = sshll.u32 %s1418_s30, 4  ;;  %s1270_s12 = scalar_lea.hbm %s1408_s4, %s1237_s14  ;;  %s1305_s13 = int_to_ptr.vmem [resolvable:$true] %s1264_s13 }
  0x6a   : > { %s393_s10 = scalar_lea.sflag [#allocation4], %s1215_s16  ;;  %s839_s17 = scalar_lea.vmem %s1257_s9, 128 }
  0x6b   : > { %p840_p0 = scmp.ne.s32.totalorder %s1257_s9, %s839_s17  ;;  %p1436_p5 = scmp.ne.s32.totalorder %s1425_s6, 0 }
  0x6c   : > { %s1021_s1 = smov [#allocation7]  }
  0x6d   : > { %p841_p7 = pnand %p840_p0, %p1436_p5  ;;  %s843_s26 = sshll.u32 %s1021_s1, 4  ;;  %s844_s26 = int_to_ptr.vmem [resolvable:$false] %s843_s26 }
  0x6e   : > { %s845_s22 = scalar_lea.vmem %s844_s26, 256  ;;  %p846_p10 = scmp.lt.s32.totalorder %s1257_s9, %s844_s26 }
  0x6f   : > { %p842_p4 = pneg %p841_p7  ;;  %p847_p12 = scmp.lt.s32.totalorder %s845_s22, %s839_s17 }
  0x71   : > { %v778_v2 = vpop.eup %777  ;;  %p848_p1 = por %p847_p12, %p846_p10 }
  0x72   : > { %v358_v3 = vmul.f32 0.5, %v778_v2 }
  0x73   : > { %p849_p2 = pnand %p848_p1, %p842_p4 }
  0x74   : > { %v359_v4 = vadd.f32 0.5, %v358_v3 }
  0x76   : > { %v360_v6 = vadd.f32 0.7, %v359_v4  ;;  %v363_v7 = vsub.f32 1.0, %v359_v4 }
  0x78   : > { %v361_v8 = vmin.f32 %v360_v6, 1.0  ;;  %v364_v9 = vadd.f32 0.5, %v363_v7 }
  0x7a   : > { %v362_v11 = vmul.f32 %v361_v8, %v359_v4  ;;  %v365_v13 = vmin.f32 %v364_v9, 1.0 }
  0x7c   : > { %v371_v14 = vmul.f32 %v362_v11, %v362_v11  ;;  %v370_v15 = vmul.f32 %v362_v11, %v355_v5  ;;  %v366_v16 = vmul.f32 %v365_v13, %v363_v7 }
  0x7e   : > { %v372_v18 = vadd.f32 %v371_v14, %v368_v12  ;;  %v373_v19 = vmul.f32 %v367_v10, %v366_v16  ;;  %v374_v20 = vmul.f32 %v366_v16, %v366_v16  ;;  %379 = vst [vmem:[%s322_s28] sm:$0xff] %v370_v15 }
  0x80   : > { %v375_v21 = vadd.f32 %v374_v20, %v369_v17 }
  0x81   : > { %852 = shalt.err (!%p849_p2)
}
  0x82   : > { %s853_s15 = scalar_lea.hbm %s1255_s29, 128  ;;  %s857_s1 = scalar_lea.hbm %s1406_s2, 256 }
  0x83   : > { %p854_p9 = scmp.ne.s32.totalorder %s1255_s29, %s853_s15  ;;  %p858_p6 = scmp.lt.u32.totalorder %s1255_s29, %s1406_s2 }
  0x84   : > { %p859_p13 = scmp.lt.u32.totalorder %s857_s1, %s853_s15  ;;  %p861_p0 = scmp.lt.u32.totalorder %s853_s15, %s1255_s29 }
  0x85   : > { %p855_p11 = pnand %p854_p9, %p1436_p5 }
  0x86   : > { %p860_p8 = por %p859_p13, %p858_p6 }
  0x87   : > { %p856_p3 = pneg %p855_p11 }
  0x88   : > { %p862_p7 = por %p861_p0, %p860_p8 }
  0x8a   : > { %p863_p4 = pnand %p862_p7, %p856_p3 }
  0x8c   : > { %866 = shalt.err (!%p863_p4)
}
  0x8d   : > { %698 = dma.vmem_to_hbm [thread:$0]  (%p1436_p5), %s1257_s9, 128, %s1255_s29, %s393_s10  }
  0x8e   : > { %s1437_s22 = scalar_lea.vmem [#allocation8], %s1218_s27  ;;  %s1438_s30 = scalar_lea.vmem [#allocation10], %s1218_s27 }
  0x8f   : > { %383 = vst [vmem:[%s1437_s22] sm:$0xff] %v372_v18  ;;  %387 = vst [vmem:[%s1438_s30] sm:$0xff] %v373_v19  ;;  %s1302_s28 = scalar_lea.hbm %s1409_s5, %s1237_s14  ;;  %s1439_s21 = sand.u32 1, %s1086_s24  }
  0x90   : > { %s1309_s1 = scalar_lea.sflag [#allocation9], %s1439_s21  ;;  %s867_s26 = scalar_lea.vmem %s1259_s0, 128 }
  0x91   : > { %p868_p10 = scmp.ne.s32.totalorder %s1259_s0, %s867_s26  ;;  %s1022_s9 = smov [#allocation8]  }
  0x92   : > { %s871_s29 = sshll.u32 %s1022_s9, 4  ;;  %s872_s29 = int_to_ptr.vmem [resolvable:$false] %s871_s29 }
  0x93   : > { %p869_p12 = pnand %p868_p10, %p1436_p5  ;;  %s873_s10 = scalar_lea.vmem %s872_s29, 256 }
  0x94   : > { %p874_p2 = scmp.lt.s32.totalorder %s1259_s0, %s872_s29  ;;  %p875_p9 = scmp.lt.s32.totalorder %s873_s10, %s867_s26 }
  0x95   : > { %p870_p1 = pneg %p869_p12 }
  0x96   : > { %p876_p11 = por %p875_p9, %p874_p2 }
  0x98   : > { %p877_p3 = pnand %p876_p11, %p870_p1 }
  0x9a   : > { %880 = shalt.err (!%p877_p3)
}
  0x9b   : > { %s881_s24 = scalar_lea.hbm %s1249_s11, 128  ;;  %s885_s30 = scalar_lea.hbm %s1407_s3, 256 }
  0x9c   : > { %p882_p6 = scmp.ne.s32.totalorder %s1249_s11, %s881_s24  ;;  %p886_p0 = scmp.lt.u32.totalorder %s1249_s11, %s1407_s3 }
  0x9d   : > { %p887_p7 = scmp.lt.u32.totalorder %s885_s30, %s881_s24  ;;  %p889_p10 = scmp.lt.u32.totalorder %s881_s24, %s1249_s11 }
  0x9e   : > { %p883_p13 = pnand %p882_p6, %p1436_p5 }
  0x9f   : > { %p888_p4 = por %p887_p7, %p886_p0 }
  0xa0   : > { %p884_p8 = pneg %p883_p13 }
  0xa1   : > { %p890_p12 = por %p889_p10, %p888_p4 }
  0xa3   : > { %p891_p1 = pnand %p890_p12, %p884_p8 }
  0xa5   : > { %894 = shalt.err (!%p891_p1)
}
  0xa6   : > { %699 = dma.vmem_to_hbm [thread:$0]  (%p1436_p5), %s1259_s0, 128, %s1249_s11, %s1309_s1  }
  0xa7   : > { %s1440_s21 = scalar_lea.vmem [#allocation11], %s1218_s27  ;;  %s895_s26 = scalar_lea.vmem %s1239_s25, 128 }
  0xa8   : > { %391 = vst [vmem:[%s1440_s21] sm:$0xff] %v375_v21  ;;  %p896_p2 = scmp.ne.s32.totalorder %s1239_s25, %s895_s26  ;;  %s1023_s9 = smov [#allocation10]  }
  0xa9   : > { %s899_s29 = sshll.u32 %s1023_s9, 4  ;;  %s900_s29 = int_to_ptr.vmem [resolvable:$false] %s899_s29 }
  0xaa   : > { %p897_p9 = pnand %p896_p2, %p1436_p5  ;;  %s901_s10 = scalar_lea.vmem %s900_s29, 256 }
  0xab   : > { %p902_p3 = scmp.lt.s32.totalorder %s1239_s25, %s900_s29  ;;  %p903_p6 = scmp.lt.s32.totalorder %s901_s10, %s895_s26 }
  0xac   : > { %p898_p11 = pneg %p897_p9 }
  0xad   : > { %p904_p13 = por %p903_p6, %p902_p3 }
  0xaf   : > { %p905_p8 = pnand %p904_p13, %p898_p11 }
  0xb1   : > { %908 = shalt.err (!%p905_p8)
}
  0xb2   : > { %s909_s27 = scalar_lea.hbm %s1270_s12, 128  ;;  %s913_s24 = scalar_lea.hbm %s1408_s4, 256 }
  0xb3   : > { %p910_p0 = scmp.ne.s32.totalorder %s1270_s12, %s909_s27  ;;  %p914_p10 = scmp.lt.u32.totalorder %s1270_s12, %s1408_s4 }
  0xb4   : > { %p915_p12 = scmp.lt.u32.totalorder %s913_s24, %s909_s27  ;;  %p917_p2 = scmp.lt.u32.totalorder %s909_s27, %s1270_s12 }
  0xb5   : > { %p911_p7 = pnand %p910_p0, %p1436_p5 }
  0xb6   : > { %p916_p1 = por %p915_p12, %p914_p10 }
  0xb7   : > { %p912_p4 = pneg %p911_p7 }
  0xb8   : > { %p918_p9 = por %p917_p2, %p916_p1 }
  0xba   : > { %p919_p11 = pnand %p918_p9, %p912_p4 }
  0xbc   : > { %922 = shalt.err (!%p919_p11)
}
  0xbd   : > { %700 = dma.vmem_to_hbm [thread:$0]  (%p1436_p5), %s1239_s25, 128, %s1270_s12, %s1309_s1  }
  0xbe   : > { %s408_s30 = scalar_lea.sflag [#allocation12], %s1215_s16  ;;  %s923_s17 = scalar_lea.vmem %s1305_s13, 128 }
  0xbf   : > { %p924_p3 = scmp.ne.s32.totalorder %s1305_s13, %s923_s17  ;;  %s1024_s15 = smov [#allocation11]  }
  0xc0   : > { %s927_s21 = sshll.u32 %s1024_s15, 4  ;;  %s928_s21 = int_to_ptr.vmem [resolvable:$false] %s927_s21 }
  0xc1   : > { %p925_p6 = pnand %p924_p3, %p1436_p5  ;;  %s929_s26 = scalar_lea.vmem %s928_s21, 256 }
  0xc2   : > { %p930_p8 = scmp.lt.s32.totalorder %s1305_s13, %s928_s21  ;;  %p931_p0 = scmp.lt.s32.totalorder %s929_s26, %s923_s17 }
  0xc3   : > { %p926_p13 = pneg %p925_p6 }
  0xc4   : > { %p932_p7 = por %p931_p0, %p930_p8 }
  0xc6   : > { %p933_p4 = pnand %p932_p7, %p926_p13 }
  0xc8   : > { %936 = shalt.err (!%p933_p4)
}
  0xc9   : > { %s937_s16 = scalar_lea.hbm %s1302_s28, 128  ;;  %s941_s1 = scalar_lea.hbm %s1409_s5, 256 }
  0xca   : > { %p938_p10 = scmp.ne.s32.totalorder %s1302_s28, %s937_s16  ;;  %p942_p2 = scmp.lt.u32.totalorder %s1302_s28, %s1409_s5 }
  0xcb   : > { %p943_p9 = scmp.lt.u32.totalorder %s941_s1, %s937_s16  ;;  %p945_p3 = scmp.lt.u32.totalorder %s937_s16, %s1302_s28 }
  0xcc   : > { %p939_p12 = pnand %p938_p10, %p1436_p5 }
  0xcd   : > { %p944_p11 = por %p943_p9, %p942_p2 }
  0xce   : > { %p940_p1 = pneg %p939_p12 }
  0xcf   : > { %p946_p6 = por %p945_p3, %p944_p11 }
  0xd1   : > { %p947_p13 = pnand %p946_p6, %p940_p1 }
  0xd3   : > { %950 = shalt.err (!%p947_p13)
}
  0xd4   : > { %701 = dma.vmem_to_hbm [thread:$0]  (%p1436_p5), %s1305_s13, 128, %s1302_s28, %s408_s30  }
  0xd5 PF: > { %s476_s10 = sand.u32 1, %s997_s18   ;;  %p1441_p8 = scmp.ne.s32.totalorder %s1426_s8, 0 }
  0xd6   : > { %p1442_p0 = scmp.ge.s32.totalorder %s1017_s23, 2  ;;  %s477_s27 = scalar_lea.sflag [#allocation4], %s476_s10 }
  0xd8   : > { %p714_p7 = pnand %p1442_p0, %p1441_p8 }
  0xda   : > { %984 = dma.done.wait (!%p714_p7), %s477_s27, 128  }
  0xdb   : > { %986 = vsyncadd (!%p714_p7), %s477_s27, 4294967168  ;;  %s1443_s0 = sadd.s32 4294967294, %s1017_s23  }
  0xdc   : > { %s485_s11 = sand.u32 1, %s1443_s0  }
  0xdd   : > { %s486_s24 = scalar_lea.sflag [#allocation9], %s485_s11 }
  0xde   : > { %988 = dma.done.wait (!%p714_p7), %s486_s24, 256  }
  0xdf   : > { %990 = vsyncadd (!%p714_p7), %s486_s24, 4294967040  ;;  %s504_s6 = scalar_lea.sflag [#allocation12], %s476_s10 }
  0xe0   : > { %992 = dma.done.wait (!%p714_p7), %s504_s6, 128  }
  0xe1   : > { %994 = vsyncadd (!%p714_p7), %s504_s6, 4294967168  ;;  %s31_s23 = sadd.s32 1, %s1017_s23   ;;  %s1444_s21 = sld [smem:[#allocation18_spill]] }
  0xe2   : > { %p28_p5 = scmp.ge.s32.totalorder %s31_s23, 4   ;;  %s1445_s22 = sld [smem:[#allocation19_spill]] }
  0xe3   : > { %s1446_s18 = smov %s1001_s19  ;;  %s1447_s19 = smov %s1005_s20 }
  0xe4   : > { %s1448_s20 = smov %s1117_s7  ;;  %30 = sbr.rel (!%p28_p5) target bundleno = 15 (0xf), region = 139 }
  0xeb   :  { %509 = vsyncpa [#allocation3], 1 }
  0xec   :  { %511 = vsyncpa [#allocation3 + $0x1], 1 }
  0xed   :  { %512 = vsyncpa [#allocation6], 1 }
  0xee   :  { %514 = vsyncpa [#allocation6 + $0x1], 1 }
  0xef   :  { %515 = vsyncpa [#allocation4], 1 }
  0xf0   :  { %517 = vsyncpa [#allocation4 + $0x1], 1 }
  0xf1   :  { %518 = vsyncpa [#allocation9], 1 }
  0xf2   :  { %520 = vsyncpa [#allocation9 + $0x1], 1 }
  0xf3   :  { %521 = vsyncpa [#allocation12], 1 }
  0xf4   :  { %523 = vsyncpa [#allocation12 + $0x1], 1 }

</bundles_post_ra>
